<compile_context>
chip_gen: v5e
topology: v5e:2x2
jax: 0.10.0
libtpu: 0.0.40
codegen_flags: <defaults>
</compile_context>

<pallas_src>
import functools
import math

import jax
import jax.numpy as jnp
from jax.experimental import pallas as pl
from jax.experimental.pallas import tpu as pltpu

_LANE = 128   # vreg lane width
_SUB = 8      # f32 sublane tile


def _round_up(x, m):
    return ((x + m - 1) // m) * m


def _stacked_lstm_kernel(*refs, h, hp, xw, has_mask, compute_dtype):
    """One grid step == one LSTM layer of one batch tile.

    xcat scratch carries [x_or_h | h0_layer] in VMEM across layers.
    """
    if has_mask:
        (x0_ref, h0_ref, mask_ref, w_ref, b_ref,
         h1_ref, c1_ref, xcat_ref) = refs
    else:
        (x0_ref, h0_ref, w_ref, b_ref,
         h1_ref, c1_ref, xcat_ref) = refs
        mask_ref = None

    layer = pl.program_id(1)          # inner (fastest) grid axis
    n_layers = pl.num_programs(1)

    # Layer 0 of this batch tile: load the padded external input into the
    # x-slot of the carry.  Stale columns left behind by later layers only
    # ever meet all-zero weight rows, so no explicit zeroing is needed.
    @pl.when(layer == 0)
    def _():
        xcat_ref[:, 0:xw] = x0_ref[...]

    # Every layer: this layer's initial hidden state into the h-slot.
    xcat_ref[:, xw:xw + hp] = h0_ref[...]

    # One fused MXU matmul per layer: [x | h] @ [W_ih ; W_hh] for the packed
    # (i, g, o) gates only (forget gate dropped: c_0 == 0 in this module).
    # bf16 operands, f32 accumulation, fused f32 bias.
    gates = jnp.dot(xcat_ref[...].astype(compute_dtype), w_ref[...],
                    preferred_element_type=jnp.float32) + b_ref[...]

    i_g = jax.nn.sigmoid(gates[:, 0 * h:1 * h])
    g_g = jnp.tanh(gates[:, 1 * h:2 * h])
    o_g = jax.nn.sigmoid(gates[:, 2 * h:3 * h])

    c_new = i_g * g_g                 # f * c_0 == 0 -> skipped
    h_new = o_g * jnp.tanh(c_new)

    h1_ref[...] = h_new
    c1_ref[...] = c_new

    # Carry dropout(h_new) forward as the next layer's input (stays in VMEM).
    @pl.when(layer + 1 < n_layers)
    def _():
        if has_mask:
            xcat_ref[:, 0:h] = h_new * mask_ref[...]
        else:
            xcat_ref[:, 0:h] = h_new


def _stacked_lstm_forward(x0, h0, drop_mask, w_cat, b_cat, *,
                          num_layers, b_pad, tb, h, hp, xw, dcat, gw,
                          compute_dtype):
    has_mask = drop_mask is not None
    kernel = functools.partial(_stacked_lstm_kernel, h=h, hp=hp, xw=xw,
                               has_mask=has_mask, compute_dtype=compute_dtype)
    n_btiles = b_pad // tb

    in_specs = [
        pl.BlockSpec((tb, xw), lambda b, l: (b, 0)),               # x0 (per b-tile)
        pl.BlockSpec((None, tb, hp), lambda b, l: (l, b, 0)),      # h0[l]
    ]
    args = [x0, h0]
    if has_mask:
        in_specs.append(pl.BlockSpec((None, tb, h), lambda b, l: (l, b, 0)))
        args.append(drop_mask)
    in_specs += [
        pl.BlockSpec((None, dcat, gw), lambda b, l: (l, 0, 0)),    # W[l] (bf16)
        pl.BlockSpec((None, 1, gw), lambda b, l: (l, 0, 0)),       # b[l] (f32)
    ]
    args += [w_cat, b_cat]

    out_specs = (
        pl.BlockSpec((None, tb, h), lambda b, l: (l, b, 0)),       # h1[l]
        pl.BlockSpec((None, tb, h), lambda b, l: (l, b, 0)),       # c1[l]
    )

    # Explicit VMEM budget: double-buffered in/out blocks + carry scratch,
    # with headroom, clamped well under every chip's physical VMEM.
    f32 = 4
    blk = (tb * xw + tb * hp + (tb * h if has_mask else 0)
           + _SUB * gw + 2 * tb * h) * f32
    blk += dcat * gw * jnp.dtype(compute_dtype).itemsize
    need = 2 * blk + tb * dcat * f32
    vmem_limit = int(min(max(2 * need, 4 * 1024 * 1024), 96 * 1024 * 1024))

    grid_spec = pltpu.PrefetchScalarGridSpec(
        num_scalar_prefetch=0,
        grid=(n_btiles, num_layers),        # batch tiles outer, layers inner
        in_specs=in_specs,
        out_specs=out_specs,
        scratch_shapes=[pltpu.VMEM((tb, dcat), jnp.float32)],      # [x | h] carry
    )
    return pl.pallas_call(
        kernel,
        out_shape=(jax.ShapeDtypeStruct((num_layers, b_pad, h), jnp.float32),
                   jax.ShapeDtypeStruct((num_layers, b_pad, h), jnp.float32)),
        grid_spec=grid_spec,
        compiler_params=pltpu.CompilerParams(
            # batch tiles may shard across v7x's two TensorCores; the layer
            # axis is a sequential carried chain.
            dimension_semantics=("parallel", "arbitrary"),
            vmem_limit_bytes=vmem_limit),
    )(*args)


class StackedLSTM:
    """JAX/Pallas port of the PyTorch StackedLSTM module (single fused kernel)."""

    def __init__(self, num_layers, input_size, rnn_size, dropout, key,
                 compute_dtype=jnp.bfloat16):
        self.num_layers = num_layers
        self.input_size = input_size
        self.H = rnn_size
        self.dropout_p = float(dropout)
        self.compute_dtype = compute_dtype

        H = rnn_size
        self.HP = _round_up(H, _LANE)                          # h-slot width
        self.XW = max(_round_up(input_size, _LANE), self.HP)   # x-slot width
        self.Dcat = self.XW + self.HP                          # [x | h] rows
        self.GW = _round_up(3 * H, _LANE)                      # packed i|g|o cols

        bound = 1.0 / math.sqrt(rnn_size)
        w_cat = jnp.zeros((num_layers, self.Dcat, self.GW), jnp.float32)
        b_cat = jnp.zeros((num_layers, 1, self.GW), jnp.float32)
        raw = []
        in_sz = input_size
        # PyTorch gate order is (i, f, g, o); only (i, g, o) are packed since
        # this module always runs with c_0 == 0 (f-gate output is never used).
        kept_gates = (0, 2, 3)
        for l in range(num_layers):
            key, k1, k2, k3, k4 = jax.random.split(key, 5)
            # PyTorch LSTMCell parameter shapes: (4H, D_in), (4H, H), (4H,), (4H,)
            w_ih = jax.random.uniform(k1, (4 * H, in_sz), jnp.float32, -bound, bound)
            w_hh = jax.random.uniform(k2, (4 * H, H), jnp.float32, -bound, bound)
            b_ih = jax.random.uniform(k3, (4 * H,), jnp.float32, -bound, bound)
            b_hh = jax.random.uniform(k4, (4 * H,), jnp.float32, -bound, bound)
            raw.append((w_ih, w_hh, b_ih, b_hh))
            for s, g in enumerate(kept_gates):
                col = s * H
                w_cat = w_cat.at[l, 0:in_sz, col:col + H].set(
                    w_ih[g * H:(g + 1) * H, :].T)
                w_cat = w_cat.at[l, self.XW:self.XW + H, col:col + H].set(
                    w_hh[g * H:(g + 1) * H, :].T)
                b_cat = b_cat.at[l, 0, col:col + H].set(
                    b_ih[g * H:(g + 1) * H] + b_hh[g * H:(g + 1) * H])
            in_sz = rnn_size
        self.w_cat = w_cat.astype(compute_dtype)   # bf16 weights, f32 MXU acc
        self.b_cat = b_cat                         # fused bias stays f32
        self.raw_params = raw                      # for the pure-JAX reference

    def __call__(self, inp, hidden, *, dropout_key=None, train=False):
        L, H, HP, XW = self.num_layers, self.H, self.HP, self.XW
        B = inp.shape[0]
        BP = _round_up(max(B, _SUB), _SUB)   # pad batch to sublane multiple
        TB = BP
        if BP > 256:                          # batch tile (parallel axis)
            TB = 256
            while BP % TB:
                TB -= _SUB

        x0 = jnp.zeros((BP, XW), jnp.float32).at[:B, :inp.shape[1]].set(inp)
        h0 = jnp.zeros((L, BP, HP), jnp.float32).at[:, :B, :H].set(hidden)
        # c_0 = zeros_like(hidden) is implicit in the kernel (f-gate dropped).

        if train and self.dropout_p > 0.0 and L > 1:
            keep_p = 1.0 - self.dropout_p
            keep = jax.random.bernoulli(dropout_key, keep_p, (L, BP, H))
            drop_mask = keep.astype(jnp.float32) / keep_p   # last layer's slice unused
        else:
            drop_mask = None   # eval: kernel variant without a mask stream

        h1_p, c1_p = _stacked_lstm_forward(
            x0, h0, drop_mask, self.w_cat, self.b_cat,
            num_layers=L, b_pad=BP, tb=TB, h=H, hp=HP, xw=XW,
            dcat=self.Dcat, gw=self.GW, compute_dtype=self.compute_dtype)

        h1 = h1_p[:, :B, :]
        c1 = c1_p[:, :B, :]
        # No dropout after the last layer, so the module's output == h1[-1].
        return h1[-1], (h1, c1)


def _reference_forward(raw_params, inp, hidden, compute_dtype=jnp.bfloat16):
    """Plain-JAX reference of the PyTorch forward (eval mode), with the same
    bf16 rounding of matmul operands the kernel applies (f32 accumulation)."""
    def q(a):
        return a.astype(compute_dtype).astype(jnp.float32)
    hi = jax.lax.Precision.HIGHEST
    x, h1, c1 = inp, [], []
    for i, (w_ih, w_hh, b_ih, b_hh) in enumerate(raw_params):
        H = w_hh.shape[1]
        gates = (jnp.dot(q(x), q(w_ih).T, precision=hi)
                 + jnp.dot(q(hidden[i]), q(w_hh).T, precision=hi)
                 + b_ih + b_hh)
        i_g = jax.nn.sigmoid(gates[:, 0:H])
        g_g = jnp.tanh(gates[:, 2 * H:3 * H])
        o_g = jax.nn.sigmoid(gates[:, 3 * H:4 * H])
        c = i_g * g_g                  # f-gate * c_0 == 0
        h = o_g * jnp.tanh(c)
        x = h
        h1.append(h)
        c1.append(c)
    return x, (jnp.stack(h1), jnp.stack(c1))


if __name__ == "__main__":
    num_layers = 2
    input_size = 16
    rnn_size = 32
    batch = 2

    root = jax.random.PRNGKey(0)
    k_params, k_x, k_h = jax.random.split(root, 3)

    model = StackedLSTM(num_layers, input_size, rnn_size, dropout=0.1, key=k_params)

    x = jax.random.normal(k_x, (batch, input_size), jnp.float32)
    hidden = jax.random.normal(k_h, (num_layers, batch, rnn_size), jnp.float32)

    out, (h_1, c_1) = model(x, hidden)   # eval-mode forward (no dropout)
    jax.block_until_ready((out, h_1, c_1))

    assert out.shape == (batch, rnn_size)
    assert h_1.shape == (num_layers, batch, rnn_size)
    assert c_1.shape == (num_layers, batch, rnn_size)

    # Numerical check against a pure-JAX reference of the PyTorch module.
    ref_out, (ref_h, ref_c) = _reference_forward(model.raw_params, x, hidden)
    assert bool(jnp.allclose(out, ref_out, atol=1e-3, rtol=1e-3)), "out mismatch"
    assert bool(jnp.allclose(h_1, ref_h, atol=1e-3, rtol=1e-3)), "h mismatch"
    assert bool(jnp.allclose(c_1, ref_c, atol=1e-3, rtol=1e-3)), "c mismatch"

    print("KERNEL_OK")
</pallas_src>

<mosaic_0001>
module attributes {stable_mosaic.version = 11 : i64} {
  func.func @_stacked_lstm_kernel(%arg0: i32, %arg1: i32, %arg2: memref<8x128xf32, #tpu.memory_space<vmem>>, %arg3: memref<1x8x128xf32, #tpu.memory_space<vmem>>, %arg4: memref<1x256x128xbf16, #tpu.memory_space<vmem>>, %arg5: memref<1x1x128xf32, #tpu.memory_space<vmem>>, %arg6: memref<1x8x32xf32, #tpu.memory_space<vmem>>, %arg7: memref<1x8x32xf32, #tpu.memory_space<vmem>>, %arg8: memref<8x256xf32, #tpu.memory_space<vmem>>) attributes {dimension_semantics = [#tpu.dimension_semantics<parallel>, #tpu.dimension_semantics<arbitrary>], iteration_bounds = array<i64: 1, 2>, scalar_prefetch = 0 : i64, scratch_operands = 1 : i64, tpu.core_type = #tpu.core_type<tc>, window_params = [{transform_indices = @transform_0, window_bounds = array<i64: 8, 128>}, {transform_indices = @transform_1, window_bounds = array<i64: 1, 8, 128>}, {transform_indices = @transform_2, window_bounds = array<i64: 1, 256, 128>}, {transform_indices = @transform_3, window_bounds = array<i64: 1, 1, 128>}, {transform_indices = @transform_4, window_bounds = array<i64: 1, 8, 32>}, {transform_indices = @transform_5, window_bounds = array<i64: 1, 8, 32>}]} {
    %c0_i32 = arith.constant 0 : i32
    %0 = arith.cmpi eq, %arg1, %c0_i32 : i32
    %1 = arith.extui %0 : i1 to i32
    %c0_i32_0 = arith.constant 0 : i32
    %2 = arith.cmpi ne, %1, %c0_i32_0 : i32
    scf.if %2 {
      %c0_21 = arith.constant 0 : index
      %c0_22 = arith.constant 0 : index
      %42 = vector.load %arg2[%c0_21, %c0_22] : memref<8x128xf32, #tpu.memory_space<vmem>>, vector<8x128xf32>
      %c0_23 = arith.constant 0 : index
      %c0_24 = arith.constant 0 : index
      %43 = vector.load %arg8[%c0_23, %c0_24] : memref<8x256xf32, #tpu.memory_space<vmem>>, vector<8x128xf32>
      tpu.vector_store %arg8[%c0_23, %c0_24], %42 {strides = array<i32>} : memref<8x256xf32, #tpu.memory_space<vmem>>, vector<8x128xf32>,
    } else {
    }
    %c0 = arith.constant 0 : index
    %c0_1 = arith.constant 0 : index
    %c0_2 = arith.constant 0 : index
    %3 = vector.load %arg3[%c0, %c0_1, %c0_2] : memref<1x8x128xf32, #tpu.memory_space<vmem>>, vector<1x8x128xf32>
    %4 = vector.shape_cast %3 : vector<1x8x128xf32> to vector<8x128xf32>
    %c0_3 = arith.constant 0 : index
    %c128 = arith.constant 128 : index
    %5 = vector.load %arg8[%c0_3, %c128] : memref<8x256xf32, #tpu.memory_space<vmem>>, vector<8x128xf32>
    tpu.vector_store %arg8[%c0_3, %c128], %4 {strides = array<i32>} : memref<8x256xf32, #tpu.memory_space<vmem>>, vector<8x128xf32>,
    %c0_4 = arith.constant 0 : index
    %c0_5 = arith.constant 0 : index
    %6 = vector.load %arg8[%c0_4, %c0_5] : memref<8x256xf32, #tpu.memory_space<vmem>>, vector<8x256xf32>
    %7 = arith.truncf %6 : vector<8x256xf32> to vector<8x256xbf16>
    %c0_6 = arith.constant 0 : index
    %c0_7 = arith.constant 0 : index
    %c0_8 = arith.constant 0 : index
    %8 = vector.load %arg4[%c0_6, %c0_7, %c0_8] : memref<1x256x128xbf16, #tpu.memory_space<vmem>>, vector<1x256x128xbf16>
    %9 = vector.shape_cast %8 : vector<1x256x128xbf16> to vector<256x128xbf16>
    %cst = arith.constant dense<0.000000e+00> : vector<8x128xf32>
    %10 = tpu.matmul %7, %9, %cst {dimension_numbers = #tpu.dot_dimension_numbers<[1], [0], [0], [1], [0, 0, 1, 1], [], []>} : vector<8x256xbf16>, vector<256x128xbf16>, vector<8x128xf32> -> vector<8x128xf32>
    %c0_9 = arith.constant 0 : index
    %c0_10 = arith.constant 0 : index
    %c0_11 = arith.constant 0 : index
    %11 = vector.load %arg5[%c0_9, %c0_10, %c0_11] : memref<1x1x128xf32, #tpu.memory_space<vmem>>, vector<1x1x128xf32>
    %12 = vector.shape_cast %11 : vector<1x1x128xf32> to vector<1x128xf32>
    %13 = vector.broadcast %12 : vector<1x128xf32> to vector<8x128xf32>
    %14 = arith.addf %10, %13 : vector<8x128xf32>
    %15 = vector.extract_strided_slice %14 {offsets = [0, 0], sizes = [8, 32], strides = [1, 1]} : vector<8x128xf32> to vector<8x32xf32>
    %16 = arith.negf %15 : vector<8x32xf32>
    %17 = math.exp %16 : vector<8x32xf32>
    %cst_12 = arith.constant 1.000000e+00 : f32
    %18 = vector.broadcast %cst_12 : f32 to vector<8x32xf32>
    %19 = arith.addf %18, %17 : vector<8x32xf32>
    %20 = arith.divf %18, %19 : vector<8x32xf32>
    %21 = vector.extract_strided_slice %14 {offsets = [0, 32], sizes = [8, 32], strides = [1, 1]} : vector<8x128xf32> to vector<8x32xf32>
    %22 = math.tanh %21 : vector<8x32xf32>
    %23 = vector.extract_strided_slice %14 {offsets = [0, 64], sizes = [8, 32], strides = [1, 1]} : vector<8x128xf32> to vector<8x32xf32>
    %24 = arith.negf %23 : vector<8x32xf32>
    %25 = math.exp %24 : vector<8x32xf32>
    %cst_13 = arith.constant 1.000000e+00 : f32
    %26 = vector.broadcast %cst_13 : f32 to vector<8x32xf32>
    %27 = arith.addf %26, %25 : vector<8x32xf32>
    %28 = arith.divf %26, %27 : vector<8x32xf32>
    %29 = arith.mulf %20, %22 : vector<8x32xf32>
    %30 = math.tanh %29 : vector<8x32xf32>
    %31 = arith.mulf %28, %30 : vector<8x32xf32>
    %c0_14 = arith.constant 0 : index
    %c0_15 = arith.constant 0 : index
    %c0_16 = arith.constant 0 : index
    %32 = vector.load %arg6[%c0_14, %c0_15, %c0_16] : memref<1x8x32xf32, #tpu.memory_space<vmem>>, vector<1x8x32xf32>
    %33 = vector.shape_cast %32 : vector<1x8x32xf32> to vector<8x32xf32>
    %34 = vector.shape_cast %31 : vector<8x32xf32> to vector<1x8x32xf32>
    tpu.vector_store %arg6[%c0_14, %c0_15, %c0_16], %34 {strides = array<i32>} : memref<1x8x32xf32, #tpu.memory_space<vmem>>, vector<1x8x32xf32>,
    %c0_17 = arith.constant 0 : index
    %c0_18 = arith.constant 0 : index
    %c0_19 = arith.constant 0 : index
    %35 = vector.load %arg7[%c0_17, %c0_18, %c0_19] : memref<1x8x32xf32, #tpu.memory_space<vmem>>, vector<1x8x32xf32>
    %36 = vector.shape_cast %35 : vector<1x8x32xf32> to vector<8x32xf32>
    %37 = vector.shape_cast %29 : vector<8x32xf32> to vector<1x8x32xf32>
    tpu.vector_store %arg7[%c0_17, %c0_18, %c0_19], %37 {strides = array<i32>} : memref<1x8x32xf32, #tpu.memory_space<vmem>>, vector<1x8x32xf32>,
    %c1_i32 = arith.constant 1 : i32
    %38 = arith.addi %arg1, %c1_i32 : i32
    %c2_i32 = arith.constant 2 : i32
    %39 = arith.cmpi slt, %38, %c2_i32 : i32
    %40 = arith.extui %39 : i1 to i32
    %c0_i32_20 = arith.constant 0 : i32
    %41 = arith.cmpi ne, %40, %c0_i32_20 : i32
    scf.if %41 {
      %c0_21 = arith.constant 0 : index
      %c0_22 = arith.constant 0 : index
      %42 = vector.load %arg8[%c0_21, %c0_22] : memref<8x256xf32, #tpu.memory_space<vmem>>, vector<8x32xf32>
      tpu.vector_store %arg8[%c0_21, %c0_22], %31 {strides = array<i32>} : memref<8x256xf32, #tpu.memory_space<vmem>>, vector<8x32xf32>,
    } else {
    }
    return
  }
  func.func @transform_0(%arg0: i32, %arg1: i32) -> (i32, i32) {
    %c0_i32 = arith.constant 0 : i32
    %c0_i32_0 = arith.constant 0 : i32
    return %arg0, %c0_i32 : i32, i32
  }
  func.func @transform_1(%arg0: i32, %arg1: i32) -> (i32, i32, i32) {
    %c0_i32 = arith.constant 0 : i32
    %c0_i32_0 = arith.constant 0 : i32
    return %arg1, %arg0, %c0_i32 : i32, i32, i32
  }
  func.func @transform_2(%arg0: i32, %arg1: i32) -> (i32, i32, i32) {
    %c0_i32 = arith.constant 0 : i32
    %c0_i32_0 = arith.constant 0 : i32
    %c0_i32_1 = arith.constant 0 : i32
    return %arg1, %c0_i32, %c0_i32_0 : i32, i32, i32
  }
  func.func @transform_3(%arg0: i32, %arg1: i32) -> (i32, i32, i32) {
    %c0_i32 = arith.constant 0 : i32
    %c0_i32_0 = arith.constant 0 : i32
    %c0_i32_1 = arith.constant 0 : i32
    return %arg1, %c0_i32, %c0_i32_0 : i32, i32, i32
  }
  func.func @transform_4(%arg0: i32, %arg1: i32) -> (i32, i32, i32) {
    %c0_i32 = arith.constant 0 : i32
    %c0_i32_0 = arith.constant 0 : i32
    return %arg1, %arg0, %c0_i32 : i32, i32, i32
  }
  func.func @transform_5(%arg0: i32, %arg1: i32) -> (i32, i32, i32) {
    %c0_i32 = arith.constant 0 : i32
    %c0_i32_0 = arith.constant 0 : i32
    return %arg1, %arg0, %c0_i32 : i32, i32, i32
  }
}

</mosaic_0001>

<bundles_post_ra>
// kernel: tpu_custom_call.1
= control target key start
LH: loop header
LB: loop body
LE: loop exit
PB: predicated region body
PF: predicated region fallthrough
CT: control target
= control target key end

     0   :  { %s1434_s0 = inlined_call_operand.hbm [shape: f32[8,128], index: 0, kind: input, shape index: {}]   ;;  %s1435_s1 = inlined_call_operand.hbm [shape: f32[2,8,128], index: 1, kind: input, shape index: {}]   ;;  %s1436_s2 = inlined_call_operand.hbm [shape: bf16[2,256,128], index: 2, kind: input, shape index: {}]   ;;  %s1437_s3 = inlined_call_operand.vmem [shape: f32[2,1,128], index: 3, kind: input, shape index: {}]   ;;  %s1438_s4 = inlined_call_operand.hbm [shape: f32[2,8,32], index: 4, kind: output, shape index: {0}]   ;;  %s1439_s5 = inlined_call_operand.hbm [shape: f32[2,8,32], index: 5, kind: output, shape index: {1}]  }
   0x1   :  { %1440 = sst [smem:[#allocation16_spill]] %s1434_s0 }
   0x2   :  { %11 = vsyncpa [#allocation4], 0 }
   0x3   :  { %12 = vsyncpa [#allocation7], 0 }
   0x4   :  { %14 = vsyncpa [#allocation7 + $0x1], 0 }
   0x5   :  { %15 = vsyncpa [#allocation5], 0 }
   0x6   :  { %17 = vsyncpa [#allocation5 + $0x1], 0 }
   0x7   :  { %18 = vsyncpa [#allocation11], 0 }
   0x8   :  { %20 = vsyncpa [#allocation11 + $0x1], 0  ;;  %s1202_s18 = smov 0   ;;  %s1204_s19 = smov 0  }
   0x9   :  { %s1206_s20 = smov 0   ;;  %s1208_s21 = smov 0  }
   0xa   :  { %s1210_s22 = smov 0   ;;  %s1212_s23 = smov 0  }
   0xb LB: > { %s35_s24 = sadd.s32 1, %s1161_s22  ;;  %s73_s25 = sadd.s32 1, %s1153_s20  ;;  %s1165_s23 = sphi %s1212_s23, %s26_s23   ;;  %s1161_s22 = sphi %s1210_s22, %s1452_s22   ;;  %s1157_s21 = sphi %s1208_s21, %s1451_s21   ;;  %s1153_s20 = sphi %s1206_s20, %s1450_s20   ;;  %s1149_s19 = sphi %s1204_s19, %s1449_s19   ;;  %s1145_s18 = sphi %s1202_s18, %s1448_s18  }
   0xc   : > { %p36_p0 = scmp.ge.s32.totalorder %s35_s24, 2  ;;  %p80_p1 = scmp.ne.s32.totalorder %s1153_s20, %s1149_s19 }
   0xd   : > { %p81_p2 = scmp.eq.s32.totalorder %s1165_s23, 0  ;;  %p759_p3 = scmp.ge.s32.totalorder %s1165_s23, 2 }
   0xe   : > { %s1454_s24 = smov (%p36_p0, %s35_s24), 0  ;;  %p892_p5 = scmp.lt.s32.totalorder %s1165_s23, 2 }
   0xf   : > { %p1243_p4 = por %p81_p2, %p80_p1  ;;  %s68_s27 = ssub.s32 %s1161_s22, %s1454_s24 }
  0x10   : > { %s232_s28 = sand.u32 1, %s1165_s23   ;;  %p71_p6 = scmp.eq.s32.totalorder %s68_s27, 0 }
  0x11   : > { %s234_s29 = sand.u32 1, %s1153_s20   ;;  %s761_s30 = sshll.u32 %s1161_s22, 3 }
  0x12   : > { %s1254_s6 = scalar_select %p71_p6, %s1153_s20, %s73_s25  }
  0x13   : > { %s760_s7 = sshll.u32 %s234_s29, 3  ;;  %s241_s10 = scalar_lea.hbm %s1435_s1, %s761_s30 }
  0x14   : > { %s243_s11 = sshll.u32 %s241_s10, 4  ;;  %s236_s12 = scalar_lea.vmem [#allocation6], %s760_s7  ;;  %s244_s11 = int_to_ptr.hbm [resolvable:$true] %s243_s11 }
  0x15   : > { %s245_s13 = sshll.u32 %s236_s12, 4  ;;  %p1263_p7 = pnand %p892_p5, %p1243_p4  ;;  %s246_s13 = int_to_ptr.vmem [resolvable:$true] %s245_s13 }
  0x16   : > { %s762_s15 = sshll.u32 %s234_s29, 7  ;;  %s1267_s16 = scalar_lea.sflag [#allocation7], %s232_s28 }
  0x17   : > { %880 = dma.hbm_to_vmem [thread:$0]  (!%p1263_p7), %s244_s11, 128, %s246_s13, %s1267_s16  }
  0x18   : > { %s844_s17 = sshll.u32 %s1161_s22, 7  ;;  %s256_s25 = scalar_lea.vmem [#allocation8], %s762_s15 }
  0x19   : > { %s1273_s27 = sshll.u32 %s256_s25, 4  ;;  %s1276_s26 = sadd.s32 4294967295, %s1165_s23   ;;  %s265_s27 = int_to_ptr.vmem [resolvable:$true] %s1273_s27 }
  0x1a   : > { %s756_s30 = sadd.s32 4294967294, %s1165_s23   ;;  %p86_p8 = scmp.ne.s32.totalorder %s1149_s19, %s1145_s18 }
  0x1b   : > { %p87_p9 = scmp.eq.s32.totalorder %s1276_s26, 0  ;;  %p164_p10 = scmp.eq.s32.totalorder %s1276_s26, 1 }
  0x1c   : > { %p170_p11 = scmp.eq.s32.totalorder %s756_s30, 1  ;;  %p757_p13 = scmp.ge.s32.totalorder %s1165_s23, 1 }
  0x1d   : > { %p1285_p12 = por %p87_p9, %p86_p8  ;;  %p1293_p0 = por %p164_p10, %p80_p1 }
  0x1e   : > { %p1297_p2 = por %p170_p11, %p86_p8  ;;  %p205_p4 = scmp.lt.s32.totalorder %s1165_s23, 3 }
  0x1f   : > { %s1446_s0 = sld [smem:[#allocation16_spill]]  ;;  %s1167_s12 = smov [#allocation3]  }
  0x20   : > { %p1306_p5 = pnand %p757_p13, %p205_p4  ;;  %s221_s13 = sshll.u32 %s1167_s12, 4  ;;  %s222_s13 = int_to_ptr.vmem [resolvable:$true] %s221_s13 }
  0x21   : > { %s261_s30 = scalar_lea.hbm %s1436_s2, %s844_s17  ;;  %s1168_s9 = smov 64  }
  0x22   : > { %p873_p1 = pneg %p1306_p5  ;;  %s262_s8 = sshll.u32 %s261_s30, 4  ;;  %s263_s8 = int_to_ptr.hbm [resolvable:$true] %s262_s8 }
  0x23   : > { %282 = sbr.rel (%p1306_p5) target bundleno = 613 (0x265), region = 36 }
  0x24   : > { %p874_p6 = pnand %p873_p1, %p87_p9 }
  0x25   : > { %s219_s10 = sshll.u32 %s1446_s0, 4  ;;  %s1169_s0 = smov 4   ;;  %s220_s10 = int_to_ptr.hbm [resolvable:$true] %s219_s10 }
  0x26   : > { %876 = dma.hbm_to_vmem [thread:$0]  (!%p874_p6), %s220_s10, 128, %s222_s13, [#allocation4]  }
  0x27   : > { %883 = dma.hbm_to_vmem [thread:$0]  (!%p1263_p7), %s263_s8, 2048, %s265_s27, %s1267_s16, %s1168_s9, %s1168_s9, %s1169_s0  }
  0x28   : > { %1128 = dma.done.wait (%p87_p9), [#allocation4], 128  }
  0x29   : > { %1130 = vsyncadd (%p87_p9), [#allocation4], 4294967168  ;;  %s289_s17 = sand.u32 1, %s1276_s26   ;;  %s1328_s12 = sand.u32 1, %s1149_s19  }
  0x2a   : > { %s1331_s10 = sshll.u32 %s1328_s12, 3  ;;  %s290_s0 = scalar_lea.sflag [#allocation7], %s289_s17 }
  0x2b   : > { %s293_s14 = scalar_lea.vmem [#allocation6], %s1331_s10 }
  0x2c   : > { %1132 = dma.done.wait (%p1285_p12), %s290_s0, 2176  }
  0x2d   : > { %1134 = vsyncadd (%p1285_p12), %s290_s0, 4294965120  ;;  %s768_s16 = sshll.u32 %s1328_s12, 7  ;;  %p344_p7 = scmp.lt.s32.totalorder %s1157_s21, 1 }
  0x2e   : > { %s1347_s15 = scalar_lea.vmem [#allocation8], %s768_s16  ;;  %s336_s25 = scalar_lea.vmem [#allocation9], %s1331_s10 }
  0x2f   : > { %s1341_s27 = scalar_select %p344_p7, %s1157_s21, 1 }
  0x30   : > { %s343_s30 = scalar_lea.vmem [#allocation10], %s1331_s10  ;;  %p771_p8 = scmp.ne.s32.totalorder %s1157_s21, 0 }
  0x31   : > { %s346_s13 = scalar_lea.vmem %s1437_s3, %s1341_s27 }
  0x32   : > { %350 = sbr.rel (%p771_p8) target bundleno = 57 (0x39), region = 52 }
  0x37   : > { %v351_v0 = vld [vmem:[#allocation3] sm:$0xff] }
  0x38   : > { %352 = vst [vmem:[#allocation2] sm:$0xff] %v351_v0 }
  0x39 PF: > { %v852_v1 = vld [vmem:[%s1347_s15 + $0x38] sm:$0xff]  ;;  %v851_v3 = vld [vmem:[%s1347_s15 + $0x30] sm:$0xff]  ;;  %v850_v6 = vld [vmem:[%s1347_s15 + $0x28] sm:$0xff]  ;;  %s1170_s9 = smov 96   ;;  %vm552_vm4 = vcmask 261120   ;;  %s1171_s17 = smov 64  }
  0x3a   : > { %v860_v2 = vld [vmem:[%s1347_s15 + $0x78] sm:$0xff]  ;;  %491 = vmatpush.bf16.msra.mxu0 %v852_v1  ;;  %v859_v4 = vld [vmem:[%s1347_s15 + $0x70] sm:$0xff]  ;;  %v858_v7 = vld [vmem:[%s1347_s15 + $0x68] sm:$0xff]  ;;  %s555_s0 = sadd.s32 1, %s1157_s21 }
  0x3b   : > { %504 = vmatpush.bf16.msra.mxu1 %v860_v2  ;;  %v353_v5 = vld [vmem:[%s293_s14] sm:$0xff]  ;;  %v849_v8 = vld [vmem:[%s1347_s15 + $0x20] sm:$0xff]  ;;  %v846_v14 = vld [vmem:[%s1347_s15 + $0x8] sm:$0xff]  ;;  %p837_p9 = scmp.ge.s32.totalorder %s555_s0, 2 }
  0x3c   : > { %v857_v9 = vld [vmem:[%s1347_s15 + $0x60] sm:$0xff]  ;;  %v848_v10 = vld [vmem:[%s1347_s15 + $0x18] sm:$0xff]  ;;  %v847_v12 = vld [vmem:[%s1347_s15 + $0x10] sm:$0xff]  ;;  %v358_v20 = vpack.c.bf16 %v353_v5, %v353_v5 }
  0x3d   : > { %v856_v11 = vld [vmem:[%s1347_s15 + $0x58] sm:$0xff]  ;;  %v855_v13 = vld [vmem:[%s1347_s15 + $0x50] sm:$0xff]  ;;  %v854_v15 = vld [vmem:[%s1347_s15 + $0x48] sm:$0xff] }
  0x3e   : > { %492 = vmatpush.bf16.msra.mxu0 %v851_v3  ;;  %v845_v16 = vld [vmem:[%s1347_s15] sm:$0xff]  ;;  %v948_v21 = vld [vmem:[%s346_s13] ss:$0 sm:$0xff] }
  0x3f   : > { %505 = vmatpush.bf16.msra.mxu1 %v859_v4  ;;  %v853_v17 = vld [vmem:[%s1347_s15 + $0x40] sm:$0xff]  ;;  %v355_v18 = vld [vmem:[#allocation2] sm:$0xff] }
  0x40   : > { %v357_v19 = vpack.c.bf16 %v355_v18, %v355_v18 }
  0x42   : > { %493 = vmatpush.bf16.msra.mxu0 %v850_v6 }
  0x43   : > { %506 = vmatpush.bf16.msra.mxu1 %v858_v7 }
  0x46   : > { %494 = vmatpush.bf16.msra.mxu0 %v849_v8 }
  0x47   : > { %507 = vmatpush.bf16.msra.mxu1 %v857_v9 }
  0x4a   : > { %495 = vmatpush.bf16.msra.mxu0 %v848_v10 }
  0x4b   : > { %508 = vmatpush.bf16.msra.mxu1 %v856_v11 }
  0x4e   : > { %496 = vmatpush.bf16.msra.mxu0 %v847_v12 }
  0x4f   : > { %509 = vmatpush.bf16.msra.mxu1 %v855_v13 }
  0x52   : > { %497 = vmatpush.bf16.msra.mxu0 %v846_v14 }
  0x53   : > { %510 = vmatpush.bf16.msra.mxu1 %v854_v15 }
  0x56   : > { %498 = vmatpush.bf16.msra.mxu0 %v845_v16 }
  0x57   : > { %511 = vmatpush.bf16.msra.mxu1 %v853_v17 }
  0x59   : > { %499 = vmatmul.bf16.vlgmr.msra.gmra.mxu0 %v357_v19 }
  0x5a   : > { %512 = vmatmul.bf16.vlgmr.msra.gmra.mxu1 %v358_v20 }
  0xd6   : > { %v500_v22 = vpop.f32.mrf.mxu0 }
  0xd7   : > { %v513_v23 = vpop.f32.mrf.mxu1  ;;  %v501_v24 = vadd.f32 %v948_v21, %v500_v22 }
  0xd9   : > { %v514_v25 = vadd.f32 %v513_v23, %v501_v24 }
  0xdb   : > { %949 = vtanh.f32 %v514_v25  ;;  %v836_v29 = vmul.f32 -1.442695, %v514_v25 }
  0xdd   : > { %951 = vpow2.f32 %v836_v29 }
  0xde   : > { %v502_v26 = vpop.f32.mrf.mxu0 }
  0xdf   : > { %v515_v27 = vpop.f32.mrf.mxu1 }
  0xe1   : > { %v950_v28 = vpop.eup %949 }
  0xe2   : > { %538 = vrot.lane.b32.xlu0 %v950_v28, %s1170_s9 }
  0xe3   : > { %v952_v30 = vpop.eup %951 }
  0xe4   : > { %v520_v31 = vadd.f32 1.0, %v952_v30 }
  0xe6   : > { %953 = vrcp.f32 %v520_v31  ;;  %v532_v37 = vand.u32 2147483648, %v520_v31  ;;  %vm526_vm1 = vweird.f32 %v520_v31  ;;  %v530_v38 = vand.u32 2147483647, %v520_v31 }
  0xe8   : > { %v533_v40 = vor.u32 1.1754944e-38, %v532_v37  ;;  %vm531_vm3 = vcmp.eq.f32.partialorder %v530_v38, 8.507059e+37 }
  0xec   : > { %v954_v32 = vpop.eup %953 }
  0xed   : > { %v522_v33 = vmul.f32 %v954_v32, %v520_v31  ;;  %vm527_vm0 = vweird.f32 %v954_v32 }
  0xee   : > { %vm528_vm2 = vmor %vm526_vm1, %vm527_vm0 }
  0xef   : > { %v523_v34 = vsub.f32 1.0, %v522_v33 }
  0xf1   : > { %v524_v35 = vmul.f32 %v954_v32, %v523_v34 }
  0xf3   : > { %v525_v36 = vadd.f32 %v954_v32, %v524_v35 }
  0xf5   : > { %v529_v39 = vsel %vm528_vm2, %v954_v32, %v525_v36 }
  0xf6   : > { %v534_v42 = vsel %vm531_vm3, %v533_v40, %v529_v39 }
 0x154   : > { %v539_v41 = vpop.permute.xlu0 %538 }
 0x155   : > { %v541_v43 = vmul.f32 %v539_v41, %v534_v42 }
 0x157   : > { %955 = vtanh.f32 %v541_v43  ;;  %554 = vst.msk [vmem:[%s343_s30] sm:$0xff] %vm552_vm4, %v541_v43 }
 0x15d   : > { %v956_v44 = vpop.eup %955 }
 0x15e   : > { %544 = vrot.lane.b32.xlu0 %v956_v44, %s1171_s17 }
 0x1d0   : > { %v545_v45 = vpop.permute.xlu0 %544 }
 0x1d1   : > { %v547_v46 = vmul.f32 %v545_v45, %v534_v42 }
 0x1d3   : > { %549 = vrot.lane.b32.xlu1 %v547_v46, %s1171_s17 }
 0x242   : > { %559 = sbr.rel (%p837_p9) target bundleno = 584 (0x248), region = 56 }
 0x245   : > { %v550_v47 = vpop.permute.xlu1 %549 }
 0x246   : > { %553 = vst.msk [vmem:[%s336_s25] sm:$0xff] %vm552_vm4, %v550_v47 }
 0x247   : > { %560 = vst.msk [vmem:[#allocation2] sm:$0xff] %vm552_vm4, %v550_v47 }
 0x248 PF: > { %s840_s14 = sshll.u32 %s1157_s21, 3  ;;  %s580_s11 = sshll.u32 %s336_s25, 4  ;;  %s581_s11 = int_to_ptr.vmem [resolvable:$true] %s580_s11 }
 0x249   : > { %s578_s26 = scalar_lea.hbm %s1438_s4, %s840_s14  ;;  %s562_s15 = scalar_lea.sflag [#allocation5], %s1328_s12 }
 0x24a   : > { %s582_s13 = sshll.u32 %s578_s26, 4  ;;  %s1067_s21 = scalar_lea.hbm %s1438_s4, 16  ;;  %s583_s13 = int_to_ptr.hbm [resolvable:$true] %s582_s13 }
 0x24b   : > { %s1061_s28 = sshra.s32 %s583_s13, 4  ;;  %s1062_s28 = int_to_ptr.hbm [resolvable:$true] %s1061_s28 }
 0x24c   : > { %s1063_s8 = scalar_lea.hbm %s1062_s28, 8  ;;  %p1068_p13 = scmp.lt.s32.totalorder %s1062_s28, %s1438_s4 }
 0x24d   : > { %p1064_p10 = scmp.ne.s32.totalorder %s1062_s28, %s1063_s8  ;;  %p1069_p4 = scmp.lt.s32.totalorder %s1067_s21, %s1063_s8 }
 0x24f   : > { %p1065_p11 = pnand %p1064_p10, %p1293_p0  ;;  %p1070_p5 = por %p1069_p4, %p1068_p13 }
 0x251   : > { %p1066_p12 = pneg %p1065_p11 }
 0x253   : > { %p1071_p1 = pnand %p1070_p5, %p1066_p12 }
 0x255   : > { %1074 = shalt.err (!%p1071_p1)
}
 0x256   : > { %869 = dma.vmem_to_hbm [thread:$0]  (%p1293_p0), %s581_s11, 128, %s583_s13, %s562_s15  }
 0x257   : > { %s593_s26 = scalar_lea.hbm %s1439_s5, %s840_s14  ;;  %s595_s9 = sshll.u32 %s343_s30, 4  ;;  %s596_s9 = int_to_ptr.vmem [resolvable:$true] %s595_s9 }
 0x258   : > { %s597_s17 = sshll.u32 %s593_s26, 4  ;;  %s567_s28 = scalar_lea.sflag [#allocation11], %s1328_s12  ;;  %s598_s17 = int_to_ptr.hbm [resolvable:$true] %s597_s17 }
 0x259   : > { %s1089_s8 = sshra.s32 %s598_s17, 4  ;;  %s1095_s11 = scalar_lea.hbm %s1439_s5, 16  ;;  %s1090_s8 = int_to_ptr.hbm [resolvable:$true] %s1089_s8 }
 0x25a   : > { %s1091_s21 = scalar_lea.hbm %s1090_s8, 8  ;;  %p1096_p9 = scmp.lt.s32.totalorder %s1090_s8, %s1439_s5 }
 0x25b   : > { %p1092_p6 = scmp.ne.s32.totalorder %s1090_s8, %s1091_s21  ;;  %p1097_p10 = scmp.lt.s32.totalorder %s1095_s11, %s1091_s21 }
 0x25d   : > { %p1093_p7 = pnand %p1092_p6, %p1293_p0  ;;  %p1098_p11 = por %p1097_p10, %p1096_p9 }
 0x25f   : > { %p1094_p8 = pneg %p1093_p7 }
 0x261   : > { %p1099_p12 = pnand %p1098_p11, %p1094_p8 }
 0x263   : > { %1102 = shalt.err (!%p1099_p12)
}
 0x264   : > { %870 = dma.vmem_to_hbm [thread:$0]  (%p1293_p0), %s596_s9, 128, %s598_s17, %s567_s28  }
 0x265 PF: > { %s609_s12 = sand.u32 1, %s1145_s18   ;;  %p885_p13 = pnand %p759_p3, %p1297_p2 }
 0x266   : > { %s610_s10 = scalar_lea.sflag [#allocation5], %s609_s12 }
 0x267   : > { %p886_p4 = pneg %p885_p13 }
 0x269   : > { %1136 = dma.done.wait (%p886_p4), %s610_s10, 128  }
 0x26a   : > { %1138 = vsyncadd (%p886_p4), %s610_s10, 4294967168  ;;  %s620_s30 = scalar_lea.sflag [#allocation11], %s609_s12 }
 0x26b   : > { %1140 = dma.done.wait (%p886_p4), %s620_s30, 128  }
 0x26c   : > { %1142 = vsyncadd (%p886_p4), %s620_s30, 4294967168  ;;  %s26_s23 = sadd.s32 1, %s1165_s23   ;;  %s1448_s18 = smov %s1149_s19 }
 0x26d   : > { %p23_p5 = scmp.ge.s32.totalorder %s26_s23, 4   ;;  %s1449_s19 = smov %s1153_s20 }
 0x26e   : > { %s1450_s20 = smov %s1254_s6  ;;  %s1451_s21 = smov %s1161_s22 }
 0x26f   : > { %s1452_s22 = smov %s1454_s24  ;;  %25 = sbr.rel (!%p23_p5) target bundleno = 11 (0xb), region = 126 }
 0x274   :  { %626 = vsyncpa [#allocation4], 1 }
 0x275   :  { %628 = vsyncpa [#allocation4 + $0x1], 1 }
 0x276   :  { %629 = vsyncpa [#allocation7], 1 }
 0x277   :  { %631 = vsyncpa [#allocation7 + $0x1], 1 }
 0x278   :  { %632 = vsyncpa [#allocation5], 1 }
 0x279   :  { %634 = vsyncpa [#allocation5 + $0x1], 1 }
 0x27a   :  { %635 = vsyncpa [#allocation11], 1 }
 0x27b   :  { %637 = vsyncpa [#allocation11 + $0x1], 1 }

</bundles_post_ra>
